<compile_context>
chip_gen: v5e
topology: v5e:2x2
jax: 0.10.0
libtpu: 0.0.40
codegen_flags: <defaults>
</compile_context>

<pallas_src>
import functools

import jax
import jax.numpy as jnp
from jax.experimental import pallas as pl
from jax.experimental.pallas import tpu as pltpu

IN_F, H1_F, H2_F, OUT_F = 6, 5, 5, 3


def _affine_slabs(slabs, w_ref, b_ref, n_out, n_in, apply_relu):
    """y[j] = sum_k w[j,k] * x[k] + b[j] as unrolled VPU broadcast-FMAs.

    slabs: list of n_in dense (8, TL) arrays (batch on sublanes x lanes).
    w_ref: SMEM (n_out, n_in) torch-layout weights; b_ref: SMEM (n_out,) bias.
    """
    out = []
    for j in range(n_out):
        acc = slabs[0] * w_ref[j, 0] + b_ref[j]
        for k in range(1, n_in):
            acc = acc + slabs[k] * w_ref[j, k]
        if apply_relu:
            acc = jnp.maximum(acc, 0.0)
        out.append(acc)
    return out


def mlp_kernel(xt_ref, w1_ref, b1_ref, w2_ref, b2_ref, w3_ref, b3_ref, ot_ref):
    # xt_ref: (6, 8, TL) VMEM tile (batch on sublane/lane). Params in SMEM.
    x = [xt_ref[k] for k in range(IN_F)]            # six dense (8, TL) slabs
    h1 = _affine_slabs(x, w1_ref, b1_ref, H1_F, IN_F, True)
    h2 = _affine_slabs(h1, w2_ref, b2_ref, H2_F, H1_F, True)
    y = _affine_slabs(h2, w3_ref, b3_ref, OUT_F, H2_F, False)
    for j in range(OUT_F):
        ot_ref[j] = y[j]                            # full-vreg, unmasked stores


def _round_up(n, m):
    return -(-n // m) * m


def _choose_tile_lane(lanes, max_tile_lane):
    """Lane-tile size: multiple of 128, capped, >=2 grid steps when possible."""
    lanes_r = _round_up(max(lanes, 1), 128)
    if lanes_r <= 256:                 # tiny batch: one or two 128-lane tiles
        return 128
    half = _round_up(-(-lanes_r // 2), 128)   # aim for >=2 steps (v7x megacore)
    return int(min(max_tile_lane, half))


@functools.partial(jax.jit, static_argnames=("max_tile_lane",))
def neural_network_forward_fm(xt, params, *, max_tile_lane=16384):
    """Feature-major fast path: xt (6, B) float32 -> logits (3, B) float32."""
    w1, b1, w2, b2, w3, b3 = params
    B = xt.shape[1]
    lanes = -(-B // 8)
    tile_lane = _choose_tile_lane(lanes, max_tile_lane)
    lanes_p = _round_up(lanes, tile_lane)
    b_pad = 8 * lanes_p
    grid = lanes_p // tile_lane

    # Pad the batch (fused by XLA with the producing op; padded samples yield
    # finite junk that is sliced off below) and take the *free* row-major
    # reshape (6, Bp) -> (6, 8, Bp/8) for sublane density.
    xt_p = jnp.pad(xt.astype(jnp.float32), ((0, 0), (0, b_pad - B)))
    xt_3d = xt_p.reshape(IN_F, 8, lanes_p)

    smem = pl.BlockSpec(memory_space=pltpu.MemorySpace.SMEM)
    w_bytes = 4 * (IN_F * H1_F + H1_F * H2_F + H2_F * OUT_F
                   + H1_F + H2_F + OUT_F)
    cost = pl.CostEstimate(
        flops=2 * b_pad * (IN_F * H1_F + H1_F * H2_F + H2_F * OUT_F),
        transcendentals=0,
        bytes_accessed=4 * b_pad * (IN_F + OUT_F) + w_bytes)

    yt_3d = pl.pallas_call(
        mlp_kernel,
        out_shape=jax.ShapeDtypeStruct((OUT_F, 8, lanes_p), jnp.float32),
        grid=(grid,),
        in_specs=[
            pl.BlockSpec((IN_F, 8, tile_lane), lambda i: (0, 0, i)),  # x tiles
            smem, smem, smem, smem, smem, smem,   # resident weights / biases
        ],
        out_specs=pl.BlockSpec((OUT_F, 8, tile_lane), lambda i: (0, 0, i)),
        compiler_params=pltpu.CompilerParams(
            dimension_semantics=("parallel",)),
        cost_estimate=cost,
    )(xt_3d, w1, b1, w2, b2, w3, b3)

    return yt_3d.reshape(OUT_F, b_pad)[:, :B]


@functools.partial(jax.jit, static_argnames=("max_tile_lane",))
def neural_network_forward(x, params, *, max_tile_lane=16384):
    """Torch contract: x (B, 6) float32 -> logits (B, 3) float32.

    Exactly one transpose per side; keep data feature-major upstream and call
    `neural_network_forward_fm` directly for transpose-free end-to-end traffic.
    """
    return neural_network_forward_fm(x.T, params, max_tile_lane=max_tile_lane).T


def init_params(key):
    """torch.nn.Linear-style init: U(-1/sqrt(fan_in), 1/sqrt(fan_in)), torch layout."""
    def linear(key, fan_in, fan_out):
        kw, kb = jax.random.split(key)
        bound = 1.0 / float(fan_in) ** 0.5
        w = jax.random.uniform(kw, (fan_out, fan_in), jnp.float32, -bound, bound)
        b = jax.random.uniform(kb, (fan_out,), jnp.float32, -bound, bound)
        return w, b

    k1, k2, k3 = jax.random.split(key, 3)
    w1, b1 = linear(k1, IN_F, H1_F)
    w2, b2 = linear(k2, H1_F, H2_F)
    w3, b3 = linear(k3, H2_F, OUT_F)
    return (w1, b1, w2, b2, w3, b3)


if __name__ == "__main__":
    key = jax.random.PRNGKey(0)
    k_params, k_x1, k_x2 = jax.random.split(key, 3)
    params = init_params(k_params)

    def ref_forward(x):   # plain-JAX reference, torch semantics y = x @ W^T + b
        w1, b1, w2, b2, w3, b3 = params
        h = jnp.maximum(x @ w1.T + b1, 0.0)
        h = jnp.maximum(h @ w2.T + b2, 0.0)
        return h @ w3.T + b3

    # Small ragged batch (single grid step, exercises padding + slice-off).
    x1 = jax.random.normal(k_x1, (37, IN_F), jnp.float32)
    y1 = neural_network_forward(x1, params)
    jax.block_until_ready(y1)
    assert y1.shape == (37, OUT_F)
    assert jnp.allclose(y1, ref_forward(x1), atol=1e-5, rtol=1e-5)

    # Slightly larger ragged batch: forces a 2-step "parallel" grid.
    x2 = jax.random.normal(k_x2, (2600, IN_F), jnp.float32)
    y2 = neural_network_forward(x2, params)
    jax.block_until_ready(y2)
    assert y2.shape == (2600, OUT_F)
    assert jnp.allclose(y2, ref_forward(x2), atol=1e-5, rtol=1e-5)

    print("KERNEL_OK")
</pallas_src>

<mosaic_0001>
module attributes {stable_mosaic.version = 11 : i64} {
  func.func @mlp_kernel(%arg0: i32, %arg1: memref<6x8x128xf32, #tpu.memory_space<vmem>>, %arg2: memref<5x6xf32, #tpu.memory_space<smem>>, %arg3: memref<5xf32, #tpu.memory_space<smem>>, %arg4: memref<5x5xf32, #tpu.memory_space<smem>>, %arg5: memref<5xf32, #tpu.memory_space<smem>>, %arg6: memref<3x5xf32, #tpu.memory_space<smem>>, %arg7: memref<3xf32, #tpu.memory_space<smem>>, %arg8: memref<3x8x128xf32, #tpu.memory_space<vmem>>) attributes {dimension_semantics = [#tpu.dimension_semantics<parallel>], iteration_bounds = array<i64: 1>, scalar_prefetch = 0 : i64, scratch_operands = 0 : i64, tpu.core_type = #tpu.core_type<tc>, window_params = [{transform_indices = @transform_0, window_bounds = array<i64: 6, 8, 128>}, {transform_indices = @transform_1, window_bounds = array<i64: 5, 6>}, {transform_indices = @transform_2, window_bounds = array<i64: 5>}, {transform_indices = @transform_3, window_bounds = array<i64: 5, 5>}, {transform_indices = @transform_4, window_bounds = array<i64: 5>}, {transform_indices = @transform_5, window_bounds = array<i64: 3, 5>}, {transform_indices = @transform_6, window_bounds = array<i64: 3>}, {transform_indices = @transform_7, window_bounds = array<i64: 3, 8, 128>}]} {
    %c0 = arith.constant 0 : index
    %c0_0 = arith.constant 0 : index
    %c0_1 = arith.constant 0 : index
    %0 = vector.load %arg1[%c0, %c0_0, %c0_1] : memref<6x8x128xf32, #tpu.memory_space<vmem>>, vector<1x8x128xf32>
    %1 = vector.shape_cast %0 : vector<1x8x128xf32> to vector<8x128xf32>
    %c1 = arith.constant 1 : index
    %c0_2 = arith.constant 0 : index
    %c0_3 = arith.constant 0 : index
    %2 = vector.load %arg1[%c1, %c0_2, %c0_3] : memref<6x8x128xf32, #tpu.memory_space<vmem>>, vector<1x8x128xf32>
    %3 = vector.shape_cast %2 : vector<1x8x128xf32> to vector<8x128xf32>
    %c2 = arith.constant 2 : index
    %c0_4 = arith.constant 0 : index
    %c0_5 = arith.constant 0 : index
    %4 = vector.load %arg1[%c2, %c0_4, %c0_5] : memref<6x8x128xf32, #tpu.memory_space<vmem>>, vector<1x8x128xf32>
    %5 = vector.shape_cast %4 : vector<1x8x128xf32> to vector<8x128xf32>
    %c3 = arith.constant 3 : index
    %c0_6 = arith.constant 0 : index
    %c0_7 = arith.constant 0 : index
    %6 = vector.load %arg1[%c3, %c0_6, %c0_7] : memref<6x8x128xf32, #tpu.memory_space<vmem>>, vector<1x8x128xf32>
    %7 = vector.shape_cast %6 : vector<1x8x128xf32> to vector<8x128xf32>
    %c4 = arith.constant 4 : index
    %c0_8 = arith.constant 0 : index
    %c0_9 = arith.constant 0 : index
    %8 = vector.load %arg1[%c4, %c0_8, %c0_9] : memref<6x8x128xf32, #tpu.memory_space<vmem>>, vector<1x8x128xf32>
    %9 = vector.shape_cast %8 : vector<1x8x128xf32> to vector<8x128xf32>
    %c5 = arith.constant 5 : index
    %c0_10 = arith.constant 0 : index
    %c0_11 = arith.constant 0 : index
    %10 = vector.load %arg1[%c5, %c0_10, %c0_11] : memref<6x8x128xf32, #tpu.memory_space<vmem>>, vector<1x8x128xf32>
    %11 = vector.shape_cast %10 : vector<1x8x128xf32> to vector<8x128xf32>
    %c0_12 = arith.constant 0 : index
    %c0_13 = arith.constant 0 : index
    %12 = memref.load %arg2[%c0_12, %c0_13] : memref<5x6xf32, #tpu.memory_space<smem>>
    %13 = vector.broadcast %12 : f32 to vector<8x128xf32>
    %14 = arith.mulf %1, %13 : vector<8x128xf32>
    %c0_14 = arith.constant 0 : index
    %15 = memref.load %arg3[%c0_14] : memref<5xf32, #tpu.memory_space<smem>>
    %16 = vector.broadcast %15 : f32 to vector<8x128xf32>
    %17 = arith.addf %14, %16 : vector<8x128xf32>
    %c0_15 = arith.constant 0 : index
    %c1_16 = arith.constant 1 : index
    %18 = memref.load %arg2[%c0_15, %c1_16] : memref<5x6xf32, #tpu.memory_space<smem>>
    %19 = vector.broadcast %18 : f32 to vector<8x128xf32>
    %20 = arith.mulf %3, %19 : vector<8x128xf32>
    %21 = arith.addf %17, %20 : vector<8x128xf32>
    %c0_17 = arith.constant 0 : index
    %c2_18 = arith.constant 2 : index
    %22 = memref.load %arg2[%c0_17, %c2_18] : memref<5x6xf32, #tpu.memory_space<smem>>
    %23 = vector.broadcast %22 : f32 to vector<8x128xf32>
    %24 = arith.mulf %5, %23 : vector<8x128xf32>
    %25 = arith.addf %21, %24 : vector<8x128xf32>
    %c0_19 = arith.constant 0 : index
    %c3_20 = arith.constant 3 : index
    %26 = memref.load %arg2[%c0_19, %c3_20] : memref<5x6xf32, #tpu.memory_space<smem>>
    %27 = vector.broadcast %26 : f32 to vector<8x128xf32>
    %28 = arith.mulf %7, %27 : vector<8x128xf32>
    %29 = arith.addf %25, %28 : vector<8x128xf32>
    %c0_21 = arith.constant 0 : index
    %c4_22 = arith.constant 4 : index
    %30 = memref.load %arg2[%c0_21, %c4_22] : memref<5x6xf32, #tpu.memory_space<smem>>
    %31 = vector.broadcast %30 : f32 to vector<8x128xf32>
    %32 = arith.mulf %9, %31 : vector<8x128xf32>
    %33 = arith.addf %29, %32 : vector<8x128xf32>
    %c0_23 = arith.constant 0 : index
    %c5_24 = arith.constant 5 : index
    %34 = memref.load %arg2[%c0_23, %c5_24] : memref<5x6xf32, #tpu.memory_space<smem>>
    %35 = vector.broadcast %34 : f32 to vector<8x128xf32>
    %36 = arith.mulf %11, %35 : vector<8x128xf32>
    %37 = arith.addf %33, %36 : vector<8x128xf32>
    %cst = arith.constant 0.000000e+00 : f32
    %38 = vector.broadcast %cst : f32 to vector<8x128xf32>
    %39 = arith.maximumf %37, %38 : vector<8x128xf32>
    %c1_25 = arith.constant 1 : index
    %c0_26 = arith.constant 0 : index
    %40 = memref.load %arg2[%c1_25, %c0_26] : memref<5x6xf32, #tpu.memory_space<smem>>
    %41 = vector.broadcast %40 : f32 to vector<8x128xf32>
    %42 = arith.mulf %1, %41 : vector<8x128xf32>
    %c1_27 = arith.constant 1 : index
    %43 = memref.load %arg3[%c1_27] : memref<5xf32, #tpu.memory_space<smem>>
    %44 = vector.broadcast %43 : f32 to vector<8x128xf32>
    %45 = arith.addf %42, %44 : vector<8x128xf32>
    %c1_28 = arith.constant 1 : index
    %c1_29 = arith.constant 1 : index
    %46 = memref.load %arg2[%c1_28, %c1_29] : memref<5x6xf32, #tpu.memory_space<smem>>
    %47 = vector.broadcast %46 : f32 to vector<8x128xf32>
    %48 = arith.mulf %3, %47 : vector<8x128xf32>
    %49 = arith.addf %45, %48 : vector<8x128xf32>
    %c1_30 = arith.constant 1 : index
    %c2_31 = arith.constant 2 : index
    %50 = memref.load %arg2[%c1_30, %c2_31] : memref<5x6xf32, #tpu.memory_space<smem>>
    %51 = vector.broadcast %50 : f32 to vector<8x128xf32>
    %52 = arith.mulf %5, %51 : vector<8x128xf32>
    %53 = arith.addf %49, %52 : vector<8x128xf32>
    %c1_32 = arith.constant 1 : index
    %c3_33 = arith.constant 3 : index
    %54 = memref.load %arg2[%c1_32, %c3_33] : memref<5x6xf32, #tpu.memory_space<smem>>
    %55 = vector.broadcast %54 : f32 to vector<8x128xf32>
    %56 = arith.mulf %7, %55 : vector<8x128xf32>
    %57 = arith.addf %53, %56 : vector<8x128xf32>
    %c1_34 = arith.constant 1 : index
    %c4_35 = arith.constant 4 : index
    %58 = memref.load %arg2[%c1_34, %c4_35] : memref<5x6xf32, #tpu.memory_space<smem>>
    %59 = vector.broadcast %58 : f32 to vector<8x128xf32>
    %60 = arith.mulf %9, %59 : vector<8x128xf32>
    %61 = arith.addf %57, %60 : vector<8x128xf32>
    %c1_36 = arith.constant 1 : index
    %c5_37 = arith.constant 5 : index
    %62 = memref.load %arg2[%c1_36, %c5_37] : memref<5x6xf32, #tpu.memory_space<smem>>
    %63 = vector.broadcast %62 : f32 to vector<8x128xf32>
    %64 = arith.mulf %11, %63 : vector<8x128xf32>
    %65 = arith.addf %61, %64 : vector<8x128xf32>
    %cst_38 = arith.constant 0.000000e+00 : f32
    %66 = vector.broadcast %cst_38 : f32 to vector<8x128xf32>
    %67 = arith.maximumf %65, %66 : vector<8x128xf32>
    %c2_39 = arith.constant 2 : index
    %c0_40 = arith.constant 0 : index
    %68 = memref.load %arg2[%c2_39, %c0_40] : memref<5x6xf32, #tpu.memory_space<smem>>
    %69 = vector.broadcast %68 : f32 to vector<8x128xf32>
    %70 = arith.mulf %1, %69 : vector<8x128xf32>
    %c2_41 = arith.constant 2 : index
    %71 = memref.load %arg3[%c2_41] : memref<5xf32, #tpu.memory_space<smem>>
    %72 = vector.broadcast %71 : f32 to vector<8x128xf32>
    %73 = arith.addf %70, %72 : vector<8x128xf32>
    %c2_42 = arith.constant 2 : index
    %c1_43 = arith.constant 1 : index
    %74 = memref.load %arg2[%c2_42, %c1_43] : memref<5x6xf32, #tpu.memory_space<smem>>
    %75 = vector.broadcast %74 : f32 to vector<8x128xf32>
    %76 = arith.mulf %3, %75 : vector<8x128xf32>
    %77 = arith.addf %73, %76 : vector<8x128xf32>
    %c2_44 = arith.constant 2 : index
    %c2_45 = arith.constant 2 : index
    %78 = memref.load %arg2[%c2_44, %c2_45] : memref<5x6xf32, #tpu.memory_space<smem>>
    %79 = vector.broadcast %78 : f32 to vector<8x128xf32>
    %80 = arith.mulf %5, %79 : vector<8x128xf32>
    %81 = arith.addf %77, %80 : vector<8x128xf32>
    %c2_46 = arith.constant 2 : index
    %c3_47 = arith.constant 3 : index
    %82 = memref.load %arg2[%c2_46, %c3_47] : memref<5x6xf32, #tpu.memory_space<smem>>
    %83 = vector.broadcast %82 : f32 to vector<8x128xf32>
    %84 = arith.mulf %7, %83 : vector<8x128xf32>
    %85 = arith.addf %81, %84 : vector<8x128xf32>
    %c2_48 = arith.constant 2 : index
    %c4_49 = arith.constant 4 : index
    %86 = memref.load %arg2[%c2_48, %c4_49] : memref<5x6xf32, #tpu.memory_space<smem>>
    %87 = vector.broadcast %86 : f32 to vector<8x128xf32>
    %88 = arith.mulf %9, %87 : vector<8x128xf32>
    %89 = arith.addf %85, %88 : vector<8x128xf32>
    %c2_50 = arith.constant 2 : index
    %c5_51 = arith.constant 5 : index
    %90 = memref.load %arg2[%c2_50, %c5_51] : memref<5x6xf32, #tpu.memory_space<smem>>
    %91 = vector.broadcast %90 : f32 to vector<8x128xf32>
    %92 = arith.mulf %11, %91 : vector<8x128xf32>
    %93 = arith.addf %89, %92 : vector<8x128xf32>
    %cst_52 = arith.constant 0.000000e+00 : f32
    %94 = vector.broadcast %cst_52 : f32 to vector<8x128xf32>
    %95 = arith.maximumf %93, %94 : vector<8x128xf32>
    %c3_53 = arith.constant 3 : index
    %c0_54 = arith.constant 0 : index
    %96 = memref.load %arg2[%c3_53, %c0_54] : memref<5x6xf32, #tpu.memory_space<smem>>
    %97 = vector.broadcast %96 : f32 to vector<8x128xf32>
    %98 = arith.mulf %1, %97 : vector<8x128xf32>
    %c3_55 = arith.constant 3 : index
    %99 = memref.load %arg3[%c3_55] : memref<5xf32, #tpu.memory_space<smem>>
    %100 = vector.broadcast %99 : f32 to vector<8x128xf32>
    %101 = arith.addf %98, %100 : vector<8x128xf32>
    %c3_56 = arith.constant 3 : index
    %c1_57 = arith.constant 1 : index
    %102 = memref.load %arg2[%c3_56, %c1_57] : memref<5x6xf32, #tpu.memory_space<smem>>
    %103 = vector.broadcast %102 : f32 to vector<8x128xf32>
    %104 = arith.mulf %3, %103 : vector<8x128xf32>
    %105 = arith.addf %101, %104 : vector<8x128xf32>
    %c3_58 = arith.constant 3 : index
    %c2_59 = arith.constant 2 : index
    %106 = memref.load %arg2[%c3_58, %c2_59] : memref<5x6xf32, #tpu.memory_space<smem>>
    %107 = vector.broadcast %106 : f32 to vector<8x128xf32>
    %108 = arith.mulf %5, %107 : vector<8x128xf32>
    %109 = arith.addf %105, %108 : vector<8x128xf32>
    %c3_60 = arith.constant 3 : index
    %c3_61 = arith.constant 3 : index
    %110 = memref.load %arg2[%c3_60, %c3_61] : memref<5x6xf32, #tpu.memory_space<smem>>
    %111 = vector.broadcast %110 : f32 to vector<8x128xf32>
    %112 = arith.mulf %7, %111 : vector<8x128xf32>
    %113 = arith.addf %109, %112 : vector<8x128xf32>
    %c3_62 = arith.constant 3 : index
    %c4_63 = arith.constant 4 : index
    %114 = memref.load %arg2[%c3_62, %c4_63] : memref<5x6xf32, #tpu.memory_space<smem>>
    %115 = vector.broadcast %114 : f32 to vector<8x128xf32>
    %116 = arith.mulf %9, %115 : vector<8x128xf32>
    %117 = arith.addf %113, %116 : vector<8x128xf32>
    %c3_64 = arith.constant 3 : index
    %c5_65 = arith.constant 5 : index
    %118 = memref.load %arg2[%c3_64, %c5_65] : memref<5x6xf32, #tpu.memory_space<smem>>
    %119 = vector.broadcast %118 : f32 to vector<8x128xf32>
    %120 = arith.mulf %11, %119 : vector<8x128xf32>
    %121 = arith.addf %117, %120 : vector<8x128xf32>
    %cst_66 = arith.constant 0.000000e+00 : f32
    %122 = vector.broadcast %cst_66 : f32 to vector<8x128xf32>
    %123 = arith.maximumf %121, %122 : vector<8x128xf32>
    %c4_67 = arith.constant 4 : index
    %c0_68 = arith.constant 0 : index
    %124 = memref.load %arg2[%c4_67, %c0_68] : memref<5x6xf32, #tpu.memory_space<smem>>
    %125 = vector.broadcast %124 : f32 to vector<8x128xf32>
    %126 = arith.mulf %1, %125 : vector<8x128xf32>
    %c4_69 = arith.constant 4 : index
    %127 = memref.load %arg3[%c4_69] : memref<5xf32, #tpu.memory_space<smem>>
    %128 = vector.broadcast %127 : f32 to vector<8x128xf32>
    %129 = arith.addf %126, %128 : vector<8x128xf32>
    %c4_70 = arith.constant 4 : index
    %c1_71 = arith.constant 1 : index
    %130 = memref.load %arg2[%c4_70, %c1_71] : memref<5x6xf32, #tpu.memory_space<smem>>
    %131 = vector.broadcast %130 : f32 to vector<8x128xf32>
    %132 = arith.mulf %3, %131 : vector<8x128xf32>
    %133 = arith.addf %129, %132 : vector<8x128xf32>
    %c4_72 = arith.constant 4 : index
    %c2_73 = arith.constant 2 : index
    %134 = memref.load %arg2[%c4_72, %c2_73] : memref<5x6xf32, #tpu.memory_space<smem>>
    %135 = vector.broadcast %134 : f32 to vector<8x128xf32>
    %136 = arith.mulf %5, %135 : vector<8x128xf32>
    %137 = arith.addf %133, %136 : vector<8x128xf32>
    %c4_74 = arith.constant 4 : index
    %c3_75 = arith.constant 3 : index
    %138 = memref.load %arg2[%c4_74, %c3_75] : memref<5x6xf32, #tpu.memory_space<smem>>
    %139 = vector.broadcast %138 : f32 to vector<8x128xf32>
    %140 = arith.mulf %7, %139 : vector<8x128xf32>
    %141 = arith.addf %137, %140 : vector<8x128xf32>
    %c4_76 = arith.constant 4 : index
    %c4_77 = arith.constant 4 : index
    %142 = memref.load %arg2[%c4_76, %c4_77] : memref<5x6xf32, #tpu.memory_space<smem>>
    %143 = vector.broadcast %142 : f32 to vector<8x128xf32>
    %144 = arith.mulf %9, %143 : vector<8x128xf32>
    %145 = arith.addf %141, %144 : vector<8x128xf32>
    %c4_78 = arith.constant 4 : index
    %c5_79 = arith.constant 5 : index
    %146 = memref.load %arg2[%c4_78, %c5_79] : memref<5x6xf32, #tpu.memory_space<smem>>
    %147 = vector.broadcast %146 : f32 to vector<8x128xf32>
    %148 = arith.mulf %11, %147 : vector<8x128xf32>
    %149 = arith.addf %145, %148 : vector<8x128xf32>
    %cst_80 = arith.constant 0.000000e+00 : f32
    %150 = vector.broadcast %cst_80 : f32 to vector<8x128xf32>
    %151 = arith.maximumf %149, %150 : vector<8x128xf32>
    %c0_81 = arith.constant 0 : index
    %c0_82 = arith.constant 0 : index
    %152 = memref.load %arg4[%c0_81, %c0_82] : memref<5x5xf32, #tpu.memory_space<smem>>
    %153 = vector.broadcast %152 : f32 to vector<8x128xf32>
    %154 = arith.mulf %39, %153 : vector<8x128xf32>
    %c0_83 = arith.constant 0 : index
    %155 = memref.load %arg5[%c0_83] : memref<5xf32, #tpu.memory_space<smem>>
    %156 = vector.broadcast %155 : f32 to vector<8x128xf32>
    %157 = arith.addf %154, %156 : vector<8x128xf32>
    %c0_84 = arith.constant 0 : index
    %c1_85 = arith.constant 1 : index
    %158 = memref.load %arg4[%c0_84, %c1_85] : memref<5x5xf32, #tpu.memory_space<smem>>
    %159 = vector.broadcast %158 : f32 to vector<8x128xf32>
    %160 = arith.mulf %67, %159 : vector<8x128xf32>
    %161 = arith.addf %157, %160 : vector<8x128xf32>
    %c0_86 = arith.constant 0 : index
    %c2_87 = arith.constant 2 : index
    %162 = memref.load %arg4[%c0_86, %c2_87] : memref<5x5xf32, #tpu.memory_space<smem>>
    %163 = vector.broadcast %162 : f32 to vector<8x128xf32>
    %164 = arith.mulf %95, %163 : vector<8x128xf32>
    %165 = arith.addf %161, %164 : vector<8x128xf32>
    %c0_88 = arith.constant 0 : index
    %c3_89 = arith.constant 3 : index
    %166 = memref.load %arg4[%c0_88, %c3_89] : memref<5x5xf32, #tpu.memory_space<smem>>
    %167 = vector.broadcast %166 : f32 to vector<8x128xf32>
    %168 = arith.mulf %123, %167 : vector<8x128xf32>
    %169 = arith.addf %165, %168 : vector<8x128xf32>
    %c0_90 = arith.constant 0 : index
    %c4_91 = arith.constant 4 : index
    %170 = memref.load %arg4[%c0_90, %c4_91] : memref<5x5xf32, #tpu.memory_space<smem>>
    %171 = vector.broadcast %170 : f32 to vector<8x128xf32>
    %172 = arith.mulf %151, %171 : vector<8x128xf32>
    %173 = arith.addf %169, %172 : vector<8x128xf32>
    %cst_92 = arith.constant 0.000000e+00 : f32
    %174 = vector.broadcast %cst_92 : f32 to vector<8x128xf32>
    %175 = arith.maximumf %173, %174 : vector<8x128xf32>
    %c1_93 = arith.constant 1 : index
    %c0_94 = arith.constant 0 : index
    %176 = memref.load %arg4[%c1_93, %c0_94] : memref<5x5xf32, #tpu.memory_space<smem>>
    %177 = vector.broadcast %176 : f32 to vector<8x128xf32>
    %178 = arith.mulf %39, %177 : vector<8x128xf32>
    %c1_95 = arith.constant 1 : index
    %179 = memref.load %arg5[%c1_95] : memref<5xf32, #tpu.memory_space<smem>>
    %180 = vector.broadcast %179 : f32 to vector<8x128xf32>
    %181 = arith.addf %178, %180 : vector<8x128xf32>
    %c1_96 = arith.constant 1 : index
    %c1_97 = arith.constant 1 : index
    %182 = memref.load %arg4[%c1_96, %c1_97] : memref<5x5xf32, #tpu.memory_space<smem>>
    %183 = vector.broadcast %182 : f32 to vector<8x128xf32>
    %184 = arith.mulf %67, %183 : vector<8x128xf32>
    %185 = arith.addf %181, %184 : vector<8x128xf32>
    %c1_98 = arith.constant 1 : index
    %c2_99 = arith.constant 2 : index
    %186 = memref.load %arg4[%c1_98, %c2_99] : memref<5x5xf32, #tpu.memory_space<smem>>
    %187 = vector.broadcast %186 : f32 to vector<8x128xf32>
    %188 = arith.mulf %95, %187 : vector<8x128xf32>
    %189 = arith.addf %185, %188 : vector<8x128xf32>
    %c1_100 = arith.constant 1 : index
    %c3_101 = arith.constant 3 : index
    %190 = memref.load %arg4[%c1_100, %c3_101] : memref<5x5xf32, #tpu.memory_space<smem>>
    %191 = vector.broadcast %190 : f32 to vector<8x128xf32>
    %192 = arith.mulf %123, %191 : vector<8x128xf32>
    %193 = arith.addf %189, %192 : vector<8x128xf32>
    %c1_102 = arith.constant 1 : index
    %c4_103 = arith.constant 4 : index
    %194 = memref.load %arg4[%c1_102, %c4_103] : memref<5x5xf32, #tpu.memory_space<smem>>
    %195 = vector.broadcast %194 : f32 to vector<8x128xf32>
    %196 = arith.mulf %151, %195 : vector<8x128xf32>
    %197 = arith.addf %193, %196 : vector<8x128xf32>
    %cst_104 = arith.constant 0.000000e+00 : f32
    %198 = vector.broadcast %cst_104 : f32 to vector<8x128xf32>
    %199 = arith.maximumf %197, %198 : vector<8x128xf32>
    %c2_105 = arith.constant 2 : index
    %c0_106 = arith.constant 0 : index
    %200 = memref.load %arg4[%c2_105, %c0_106] : memref<5x5xf32, #tpu.memory_space<smem>>
    %201 = vector.broadcast %200 : f32 to vector<8x128xf32>
    %202 = arith.mulf %39, %201 : vector<8x128xf32>
    %c2_107 = arith.constant 2 : index
    %203 = memref.load %arg5[%c2_107] : memref<5xf32, #tpu.memory_space<smem>>
    %204 = vector.broadcast %203 : f32 to vector<8x128xf32>
    %205 = arith.addf %202, %204 : vector<8x128xf32>
    %c2_108 = arith.constant 2 : index
    %c1_109 = arith.constant 1 : index
    %206 = memref.load %arg4[%c2_108, %c1_109] : memref<5x5xf32, #tpu.memory_space<smem>>
    %207 = vector.broadcast %206 : f32 to vector<8x128xf32>
    %208 = arith.mulf %67, %207 : vector<8x128xf32>
    %209 = arith.addf %205, %208 : vector<8x128xf32>
    %c2_110 = arith.constant 2 : index
    %c2_111 = arith.constant 2 : index
    %210 = memref.load %arg4[%c2_110, %c2_111] : memref<5x5xf32, #tpu.memory_space<smem>>
    %211 = vector.broadcast %210 : f32 to vector<8x128xf32>
    %212 = arith.mulf %95, %211 : vector<8x128xf32>
    %213 = arith.addf %209, %212 : vector<8x128xf32>
    %c2_112 = arith.constant 2 : index
    %c3_113 = arith.constant 3 : index
    %214 = memref.load %arg4[%c2_112, %c3_113] : memref<5x5xf32, #tpu.memory_space<smem>>
    %215 = vector.broadcast %214 : f32 to vector<8x128xf32>
    %216 = arith.mulf %123, %215 : vector<8x128xf32>
    %217 = arith.addf %213, %216 : vector<8x128xf32>
    %c2_114 = arith.constant 2 : index
    %c4_115 = arith.constant 4 : index
    %218 = memref.load %arg4[%c2_114, %c4_115] : memref<5x5xf32, #tpu.memory_space<smem>>
    %219 = vector.broadcast %218 : f32 to vector<8x128xf32>
    %220 = arith.mulf %151, %219 : vector<8x128xf32>
    %221 = arith.addf %217, %220 : vector<8x128xf32>
    %cst_116 = arith.constant 0.000000e+00 : f32
    %222 = vector.broadcast %cst_116 : f32 to vector<8x128xf32>
    %223 = arith.maximumf %221, %222 : vector<8x128xf32>
    %c3_117 = arith.constant 3 : index
    %c0_118 = arith.constant 0 : index
    %224 = memref.load %arg4[%c3_117, %c0_118] : memref<5x5xf32, #tpu.memory_space<smem>>
    %225 = vector.broadcast %224 : f32 to vector<8x128xf32>
    %226 = arith.mulf %39, %225 : vector<8x128xf32>
    %c3_119 = arith.constant 3 : index
    %227 = memref.load %arg5[%c3_119] : memref<5xf32, #tpu.memory_space<smem>>
    %228 = vector.broadcast %227 : f32 to vector<8x128xf32>
    %229 = arith.addf %226, %228 : vector<8x128xf32>
    %c3_120 = arith.constant 3 : index
    %c1_121 = arith.constant 1 : index
    %230 = memref.load %arg4[%c3_120, %c1_121] : memref<5x5xf32, #tpu.memory_space<smem>>
    %231 = vector.broadcast %230 : f32 to vector<8x128xf32>
    %232 = arith.mulf %67, %231 : vector<8x128xf32>
    %233 = arith.addf %229, %232 : vector<8x128xf32>
    %c3_122 = arith.constant 3 : index
    %c2_123 = arith.constant 2 : index
    %234 = memref.load %arg4[%c3_122, %c2_123] : memref<5x5xf32, #tpu.memory_space<smem>>
    %235 = vector.broadcast %234 : f32 to vector<8x128xf32>
    %236 = arith.mulf %95, %235 : vector<8x128xf32>
    %237 = arith.addf %233, %236 : vector<8x128xf32>
    %c3_124 = arith.constant 3 : index
    %c3_125 = arith.constant 3 : index
    %238 = memref.load %arg4[%c3_124, %c3_125] : memref<5x5xf32, #tpu.memory_space<smem>>
    %239 = vector.broadcast %238 : f32 to vector<8x128xf32>
    %240 = arith.mulf %123, %239 : vector<8x128xf32>
    %241 = arith.addf %237, %240 : vector<8x128xf32>
    %c3_126 = arith.constant 3 : index
    %c4_127 = arith.constant 4 : index
    %242 = memref.load %arg4[%c3_126, %c4_127] : memref<5x5xf32, #tpu.memory_space<smem>>
    %243 = vector.broadcast %242 : f32 to vector<8x128xf32>
    %244 = arith.mulf %151, %243 : vector<8x128xf32>
    %245 = arith.addf %241, %244 : vector<8x128xf32>
    %cst_128 = arith.constant 0.000000e+00 : f32
    %246 = vector.broadcast %cst_128 : f32 to vector<8x128xf32>
    %247 = arith.maximumf %245, %246 : vector<8x128xf32>
    %c4_129 = arith.constant 4 : index
    %c0_130 = arith.constant 0 : index
    %248 = memref.load %arg4[%c4_129, %c0_130] : memref<5x5xf32, #tpu.memory_space<smem>>
    %249 = vector.broadcast %248 : f32 to vector<8x128xf32>
    %250 = arith.mulf %39, %249 : vector<8x128xf32>
    %c4_131 = arith.constant 4 : index
    %251 = memref.load %arg5[%c4_131] : memref<5xf32, #tpu.memory_space<smem>>
    %252 = vector.broadcast %251 : f32 to vector<8x128xf32>
    %253 = arith.addf %250, %252 : vector<8x128xf32>
    %c4_132 = arith.constant 4 : index
    %c1_133 = arith.constant 1 : index
    %254 = memref.load %arg4[%c4_132, %c1_133] : memref<5x5xf32, #tpu.memory_space<smem>>
    %255 = vector.broadcast %254 : f32 to vector<8x128xf32>
    %256 = arith.mulf %67, %255 : vector<8x128xf32>
    %257 = arith.addf %253, %256 : vector<8x128xf32>
    %c4_134 = arith.constant 4 : index
    %c2_135 = arith.constant 2 : index
    %258 = memref.load %arg4[%c4_134, %c2_135] : memref<5x5xf32, #tpu.memory_space<smem>>
    %259 = vector.broadcast %258 : f32 to vector<8x128xf32>
    %260 = arith.mulf %95, %259 : vector<8x128xf32>
    %261 = arith.addf %257, %260 : vector<8x128xf32>
    %c4_136 = arith.constant 4 : index
    %c3_137 = arith.constant 3 : index
    %262 = memref.load %arg4[%c4_136, %c3_137] : memref<5x5xf32, #tpu.memory_space<smem>>
    %263 = vector.broadcast %262 : f32 to vector<8x128xf32>
    %264 = arith.mulf %123, %263 : vector<8x128xf32>
    %265 = arith.addf %261, %264 : vector<8x128xf32>
    %c4_138 = arith.constant 4 : index
    %c4_139 = arith.constant 4 : index
    %266 = memref.load %arg4[%c4_138, %c4_139] : memref<5x5xf32, #tpu.memory_space<smem>>
    %267 = vector.broadcast %266 : f32 to vector<8x128xf32>
    %268 = arith.mulf %151, %267 : vector<8x128xf32>
    %269 = arith.addf %265, %268 : vector<8x128xf32>
    %cst_140 = arith.constant 0.000000e+00 : f32
    %270 = vector.broadcast %cst_140 : f32 to vector<8x128xf32>
    %271 = arith.maximumf %269, %270 : vector<8x128xf32>
    %c0_141 = arith.constant 0 : index
    %c0_142 = arith.constant 0 : index
    %272 = memref.load %arg6[%c0_141, %c0_142] : memref<3x5xf32, #tpu.memory_space<smem>>
    %273 = vector.broadcast %272 : f32 to vector<8x128xf32>
    %274 = arith.mulf %175, %273 : vector<8x128xf32>
    %c0_143 = arith.constant 0 : index
    %275 = memref.load %arg7[%c0_143] : memref<3xf32, #tpu.memory_space<smem>>
    %276 = vector.broadcast %275 : f32 to vector<8x128xf32>
    %277 = arith.addf %274, %276 : vector<8x128xf32>
    %c0_144 = arith.constant 0 : index
    %c1_145 = arith.constant 1 : index
    %278 = memref.load %arg6[%c0_144, %c1_145] : memref<3x5xf32, #tpu.memory_space<smem>>
    %279 = vector.broadcast %278 : f32 to vector<8x128xf32>
    %280 = arith.mulf %199, %279 : vector<8x128xf32>
    %281 = arith.addf %277, %280 : vector<8x128xf32>
    %c0_146 = arith.constant 0 : index
    %c2_147 = arith.constant 2 : index
    %282 = memref.load %arg6[%c0_146, %c2_147] : memref<3x5xf32, #tpu.memory_space<smem>>
    %283 = vector.broadcast %282 : f32 to vector<8x128xf32>
    %284 = arith.mulf %223, %283 : vector<8x128xf32>
    %285 = arith.addf %281, %284 : vector<8x128xf32>
    %c0_148 = arith.constant 0 : index
    %c3_149 = arith.constant 3 : index
    %286 = memref.load %arg6[%c0_148, %c3_149] : memref<3x5xf32, #tpu.memory_space<smem>>
    %287 = vector.broadcast %286 : f32 to vector<8x128xf32>
    %288 = arith.mulf %247, %287 : vector<8x128xf32>
    %289 = arith.addf %285, %288 : vector<8x128xf32>
    %c0_150 = arith.constant 0 : index
    %c4_151 = arith.constant 4 : index
    %290 = memref.load %arg6[%c0_150, %c4_151] : memref<3x5xf32, #tpu.memory_space<smem>>
    %291 = vector.broadcast %290 : f32 to vector<8x128xf32>
    %292 = arith.mulf %271, %291 : vector<8x128xf32>
    %293 = arith.addf %289, %292 : vector<8x128xf32>
    %c1_152 = arith.constant 1 : index
    %c0_153 = arith.constant 0 : index
    %294 = memref.load %arg6[%c1_152, %c0_153] : memref<3x5xf32, #tpu.memory_space<smem>>
    %295 = vector.broadcast %294 : f32 to vector<8x128xf32>
    %296 = arith.mulf %175, %295 : vector<8x128xf32>
    %c1_154 = arith.constant 1 : index
    %297 = memref.load %arg7[%c1_154] : memref<3xf32, #tpu.memory_space<smem>>
    %298 = vector.broadcast %297 : f32 to vector<8x128xf32>
    %299 = arith.addf %296, %298 : vector<8x128xf32>
    %c1_155 = arith.constant 1 : index
    %c1_156 = arith.constant 1 : index
    %300 = memref.load %arg6[%c1_155, %c1_156] : memref<3x5xf32, #tpu.memory_space<smem>>
    %301 = vector.broadcast %300 : f32 to vector<8x128xf32>
    %302 = arith.mulf %199, %301 : vector<8x128xf32>
    %303 = arith.addf %299, %302 : vector<8x128xf32>
    %c1_157 = arith.constant 1 : index
    %c2_158 = arith.constant 2 : index
    %304 = memref.load %arg6[%c1_157, %c2_158] : memref<3x5xf32, #tpu.memory_space<smem>>
    %305 = vector.broadcast %304 : f32 to vector<8x128xf32>
    %306 = arith.mulf %223, %305 : vector<8x128xf32>
    %307 = arith.addf %303, %306 : vector<8x128xf32>
    %c1_159 = arith.constant 1 : index
    %c3_160 = arith.constant 3 : index
    %308 = memref.load %arg6[%c1_159, %c3_160] : memref<3x5xf32, #tpu.memory_space<smem>>
    %309 = vector.broadcast %308 : f32 to vector<8x128xf32>
    %310 = arith.mulf %247, %309 : vector<8x128xf32>
    %311 = arith.addf %307, %310 : vector<8x128xf32>
    %c1_161 = arith.constant 1 : index
    %c4_162 = arith.constant 4 : index
    %312 = memref.load %arg6[%c1_161, %c4_162] : memref<3x5xf32, #tpu.memory_space<smem>>
    %313 = vector.broadcast %312 : f32 to vector<8x128xf32>
    %314 = arith.mulf %271, %313 : vector<8x128xf32>
    %315 = arith.addf %311, %314 : vector<8x128xf32>
    %c2_163 = arith.constant 2 : index
    %c0_164 = arith.constant 0 : index
    %316 = memref.load %arg6[%c2_163, %c0_164] : memref<3x5xf32, #tpu.memory_space<smem>>
    %317 = vector.broadcast %316 : f32 to vector<8x128xf32>
    %318 = arith.mulf %175, %317 : vector<8x128xf32>
    %c2_165 = arith.constant 2 : index
    %319 = memref.load %arg7[%c2_165] : memref<3xf32, #tpu.memory_space<smem>>
    %320 = vector.broadcast %319 : f32 to vector<8x128xf32>
    %321 = arith.addf %318, %320 : vector<8x128xf32>
    %c2_166 = arith.constant 2 : index
    %c1_167 = arith.constant 1 : index
    %322 = memref.load %arg6[%c2_166, %c1_167] : memref<3x5xf32, #tpu.memory_space<smem>>
    %323 = vector.broadcast %322 : f32 to vector<8x128xf32>
    %324 = arith.mulf %199, %323 : vector<8x128xf32>
    %325 = arith.addf %321, %324 : vector<8x128xf32>
    %c2_168 = arith.constant 2 : index
    %c2_169 = arith.constant 2 : index
    %326 = memref.load %arg6[%c2_168, %c2_169] : memref<3x5xf32, #tpu.memory_space<smem>>
    %327 = vector.broadcast %326 : f32 to vector<8x128xf32>
    %328 = arith.mulf %223, %327 : vector<8x128xf32>
    %329 = arith.addf %325, %328 : vector<8x128xf32>
    %c2_170 = arith.constant 2 : index
    %c3_171 = arith.constant 3 : index
    %330 = memref.load %arg6[%c2_170, %c3_171] : memref<3x5xf32, #tpu.memory_space<smem>>
    %331 = vector.broadcast %330 : f32 to vector<8x128xf32>
    %332 = arith.mulf %247, %331 : vector<8x128xf32>
    %333 = arith.addf %329, %332 : vector<8x128xf32>
    %c2_172 = arith.constant 2 : index
    %c4_173 = arith.constant 4 : index
    %334 = memref.load %arg6[%c2_172, %c4_173] : memref<3x5xf32, #tpu.memory_space<smem>>
    %335 = vector.broadcast %334 : f32 to vector<8x128xf32>
    %336 = arith.mulf %271, %335 : vector<8x128xf32>
    %337 = arith.addf %333, %336 : vector<8x128xf32>
    %c0_174 = arith.constant 0 : index
    %c0_175 = arith.constant 0 : index
    %c0_176 = arith.constant 0 : index
    %338 = vector.load %arg8[%c0_174, %c0_175, %c0_176] : memref<3x8x128xf32, #tpu.memory_space<vmem>>, vector<1x8x128xf32>
    %339 = vector.shape_cast %338 : vector<1x8x128xf32> to vector<8x128xf32>
    %340 = vector.shape_cast %293 : vector<8x128xf32> to vector<1x8x128xf32>
    tpu.vector_store %arg8[%c0_174, %c0_175, %c0_176], %340 {strides = array<i32>} : memref<3x8x128xf32, #tpu.memory_space<vmem>>, vector<1x8x128xf32>,
    %c1_177 = arith.constant 1 : index
    %c0_178 = arith.constant 0 : index
    %c0_179 = arith.constant 0 : index
    %341 = vector.load %arg8[%c1_177, %c0_178, %c0_179] : memref<3x8x128xf32, #tpu.memory_space<vmem>>, vector<1x8x128xf32>
    %342 = vector.shape_cast %341 : vector<1x8x128xf32> to vector<8x128xf32>
    %343 = vector.shape_cast %315 : vector<8x128xf32> to vector<1x8x128xf32>
    tpu.vector_store %arg8[%c1_177, %c0_178, %c0_179], %343 {strides = array<i32>} : memref<3x8x128xf32, #tpu.memory_space<vmem>>, vector<1x8x128xf32>,
    %c2_180 = arith.constant 2 : index
    %c0_181 = arith.constant 0 : index
    %c0_182 = arith.constant 0 : index
    %344 = vector.load %arg8[%c2_180, %c0_181, %c0_182] : memref<3x8x128xf32, #tpu.memory_space<vmem>>, vector<1x8x128xf32>
    %345 = vector.shape_cast %344 : vector<1x8x128xf32> to vector<8x128xf32>
    %346 = vector.shape_cast %337 : vector<8x128xf32> to vector<1x8x128xf32>
    tpu.vector_store %arg8[%c2_180, %c0_181, %c0_182], %346 {strides = array<i32>} : memref<3x8x128xf32, #tpu.memory_space<vmem>>, vector<1x8x128xf32>,
    return
  }
  func.func @transform_0(%arg0: i32) -> (i32, i32, i32) {
    %c0_i32 = arith.constant 0 : i32
    %c0_i32_0 = arith.constant 0 : i32
    %c0_i32_1 = arith.constant 0 : i32
    return %c0_i32, %c0_i32_0, %arg0 : i32, i32, i32
  }
  func.func @transform_1(%arg0: i32) -> (i32, i32) {
    %c0_i32 = arith.constant 0 : i32
    %c0_i32_0 = arith.constant 0 : i32
    %c0_i32_1 = arith.constant 0 : i32
    return %c0_i32, %c0_i32_0 : i32, i32
  }
  func.func @transform_2(%arg0: i32) -> i32 {
    %c0_i32 = arith.constant 0 : i32
    %c0_i32_0 = arith.constant 0 : i32
    return %c0_i32 : i32
  }
  func.func @transform_3(%arg0: i32) -> (i32, i32) {
    %c0_i32 = arith.constant 0 : i32
    %c0_i32_0 = arith.constant 0 : i32
    %c0_i32_1 = arith.constant 0 : i32
    return %c0_i32, %c0_i32_0 : i32, i32
  }
  func.func @transform_4(%arg0: i32) -> i32 {
    %c0_i32 = arith.constant 0 : i32
    %c0_i32_0 = arith.constant 0 : i32
    return %c0_i32 : i32
  }
  func.func @transform_5(%arg0: i32) -> (i32, i32) {
    %c0_i32 = arith.constant 0 : i32
    %c0_i32_0 = arith.constant 0 : i32
    %c0_i32_1 = arith.constant 0 : i32
    return %c0_i32, %c0_i32_0 : i32, i32
  }
  func.func @transform_6(%arg0: i32) -> i32 {
    %c0_i32 = arith.constant 0 : i32
    %c0_i32_0 = arith.constant 0 : i32
    return %c0_i32 : i32
  }
  func.func @transform_7(%arg0: i32) -> (i32, i32, i32) {
    %c0_i32 = arith.constant 0 : i32
    %c0_i32_0 = arith.constant 0 : i32
    %c0_i32_1 = arith.constant 0 : i32
    return %c0_i32, %c0_i32_0, %arg0 : i32, i32, i32
  }
}

</mosaic_0001>

<bundles_post_ra>
// kernel: neural_network_forward_fm.1
= control target key start
LH: loop header
LB: loop body
LE: loop exit
PB: predicated region body
PF: predicated region fallthrough
CT: control target
= control target key end

     0   :  { %12 = vsyncpa [#allocation3], 0  ;;  %s875_s0 = inlined_call_operand.vmem [shape: f32[6,8,128], index: 0, kind: input, shape index: {}]   ;;  %s876_s1 = inlined_call_operand.vmem [shape: f32[5,6], index: 1, kind: input, shape index: {}]   ;;  %s877_s2 = inlined_call_operand.vmem [shape: f32[5], index: 2, kind: input, shape index: {}]   ;;  %s878_s3 = inlined_call_operand.vmem [shape: f32[5,5], index: 3, kind: input, shape index: {}]   ;;  %s879_s4 = inlined_call_operand.vmem [shape: f32[5], index: 4, kind: input, shape index: {}]   ;;  %s880_s5 = inlined_call_operand.vmem [shape: f32[3,5], index: 5, kind: input, shape index: {}]   ;;  %s881_s6 = inlined_call_operand.vmem [shape: f32[3], index: 6, kind: input, shape index: {}]   ;;  %s882_s7 = inlined_call_operand.vmem [shape: f32[3,8,128], index: 7, kind: output, shape index: {}]  }
   0x1   :  { %13 = vsyncpa [#allocation5], 0 }
   0x2   :  { %14 = vsyncpa [#allocation8], 0  ;;  %s32_s26 = sshll.u32 %s877_s2, 4  ;;  %s33_s26 = int_to_ptr.vmem [resolvable:$true] %s32_s26 }
   0x3   :  { %15 = vsyncpa [#allocation11], 0  ;;  %s50_s29 = sshll.u32 %s879_s4, 4  ;;  %s607_s30 = smov [#allocation4]   ;;  %s51_s29 = int_to_ptr.vmem [resolvable:$true] %s50_s29 }
   0x4   :  { %35 = dma.vmem_to_smem %s33_s26, 16, %s607_s30, [#allocation5]  }
   0x5   :  { %s608_s8 = smov [#allocation7]   ;;  %s23_s11 = sshll.u32 %s876_s1, 4  ;;  %s24_s11 = int_to_ptr.vmem [resolvable:$true] %s23_s11 }
   0x6   :  { %53 = dma.vmem_to_smem %s51_s29, 16, %s608_s8, [#allocation8]  }
   0x7   :  { %s41_s2 = sshll.u32 %s878_s3, 4  ;;  %s609_s14 = smov [#allocation2]   ;;  %s42_s2 = int_to_ptr.vmem [resolvable:$true] %s41_s2 }
   0x8   :  { %26 = dma.vmem_to_smem %s24_s11, 128, %s609_s14, [#allocation3]  }
   0x9   :  { %s610_s15 = smov [#allocation6]   ;;  %s59_s17 = sshll.u32 %s880_s5, 4  ;;  %s60_s17 = int_to_ptr.vmem [resolvable:$true] %s59_s17 }
   0xa   :  { %44 = dma.vmem_to_smem %s42_s2, 128, %s610_s15, [#allocation5]  }
   0xb   :  { %s68_s20 = sshll.u32 %s881_s6, 4  ;;  %s611_s1 = smov [#allocation9]   ;;  %s69_s20 = int_to_ptr.vmem [resolvable:$true] %s68_s20 }
   0xc   :  { %62 = dma.vmem_to_smem %s60_s17, 64, %s611_s1, [#allocation8]  }
   0xd   :  { %s612_s21 = smov [#allocation10]  }
   0xe   :  { %71 = dma.vmem_to_smem %s69_s20, 16, %s612_s21, [#allocation11]  }
   0xf   :  { %599 = dma.done.wait [#allocation3], 128  }
  0x10   :  { %600 = vsyncadd [#allocation3], 4294967168 }
  0x11   :  { %601 = dma.done.wait [#allocation5], 144  }
  0x12   :  { %602 = vsyncadd [#allocation5], 4294967152 }
  0x13   :  { %603 = dma.done.wait [#allocation8], 80  }
  0x14   :  { %604 = vsyncadd [#allocation8], 4294967216 }
  0x15   :  { %605 = dma.done.wait [#allocation11], 16  }
  0x16   :  { %606 = vsyncadd [#allocation11], 4294967280 }
  0x17   :  { %96 = sfence }
  0x18   :  { %s108_s3 = sld [smem:[#allocation2]]  ;;  %v680_v0 = vld [vmem:[%s875_s0] sm:$0xff]  ;;  %v688_v3 = vld [vmem:[%s875_s0 + $0x8] sm:$0xff]  ;;  %v700_v9 = vld [vmem:[%s875_s0 + $0x10] sm:$0xff] }
  0x19   :  { %s111_s5 = sld [smem:[#allocation4]]  ;;  %v709_v19 = vld [vmem:[%s875_s0 + $0x18] sm:$0xff]  ;;  %v727_v29 = vld [vmem:[%s875_s0 + $0x20] sm:$0xff]  ;;  %v743_v43 = vld [vmem:[%s875_s0 + $0x28] sm:$0xff] }
  0x1a   :  { %s442_s22 = sld [smem:[#allocation2 + $0x1]] }
  0x1b   :  { %s671_s23 = sld [smem:[#allocation2 + $0x2]] }
  0x1c   :  { %s673_s6 = sld [smem:[#allocation2 + $0x3]] }
  0x1d   :  { %s675_s24 = sld [smem:[#allocation2 + $0x4]] }
  0x1e   :  { %v109_v1 = vstv %s108_s3  ;;  %s682_s27 = sld [smem:[#allocation2 + $0x5]] }
  0x1f   :  { %s447_s28 = sld [smem:[#allocation2 + $0x80]]  ;;  %v110_v2 = vmul.f32 %v109_v1, %v680_v0  ;;  %v112_v4 = vstv %s111_s5 }
  0x20   :  { %s448_s29 = sld [smem:[#allocation4 + $0x1]]  ;;  %v115_v5 = vstv %s442_s22 }
  0x21   :  { %s449_s30 = sld [smem:[#allocation2 + $0x81]]  ;;  %v113_v6 = vadd.f32 %v112_v4, %v110_v2  ;;  %v116_v7 = vmul.f32 %v688_v3, %v115_v5  ;;  %v119_v10 = vstv %s671_s23 }
  0x22   :  { %s450_s10 = sld [smem:[#allocation2 + $0x82]]  ;;  %v120_v18 = vmul.f32 %v700_v9, %v119_v10  ;;  %v123_v20 = vstv %s673_s6 }
  0x23   :  { %s690_s11 = sld [smem:[#allocation2 + $0x83]]  ;;  %v117_v17 = vadd.f32 %v116_v7, %v113_v6  ;;  %v124_v26 = vmul.f32 %v709_v19, %v123_v20  ;;  %v127_v30 = vstv %s675_s24 }
  0x24   :  { %s692_s12 = sld [smem:[#allocation2 + $0x84]]  ;;  %v128_v41 = vmul.f32 %v727_v29, %v127_v30  ;;  %v131_v44 = vstv %s682_s27 }
  0x25   :  { %v136_v8 = vstv %s447_s28  ;;  %s695_s13 = sld [smem:[#allocation2 + $0x85]]  ;;  %v121_v25 = vadd.f32 %v120_v18, %v117_v17  ;;  %v132_v55 = vmul.f32 %v743_v43, %v131_v44 }
  0x26   :  { %v137_v11 = vmul.f32 %v136_v8, %v680_v0  ;;  %v139_v12 = vstv %s448_s29  ;;  %s454_s15 = sld [smem:[#allocation2 + $0x100]] }
  0x27   :  { %v142_v13 = vstv %s449_s30  ;;  %s455_s4 = sld [smem:[#allocation4 + $0x2]]  ;;  %v125_v40 = vadd.f32 %v124_v26, %v121_v25 }
  0x28   :  { %v140_v14 = vadd.f32 %v139_v12, %v137_v11  ;;  %v143_v15 = vmul.f32 %v688_v3, %v142_v13  ;;  %v146_v16 = vstv %s450_s10  ;;  %s456_s16 = sld [smem:[#allocation2 + $0x101]] }
  0x29   :  { %s457_s17 = sld [smem:[#allocation2 + $0x102]]  ;;  %v147_v22 = vmul.f32 %v700_v9, %v146_v16  ;;  %v150_v23 = vstv %s690_s11  ;;  %v129_v54 = vadd.f32 %v128_v41, %v125_v40 }
  0x2a   :  { %s712_s20 = sld [smem:[#allocation2 + $0x103]]  ;;  %v144_v21 = vadd.f32 %v143_v15, %v140_v14  ;;  %v151_v31 = vmul.f32 %v709_v19, %v150_v23  ;;  %v154_v32 = vstv %s692_s12 }
  0x2b   :  { %s716_s1 = sld [smem:[#allocation2 + $0x104]]  ;;  %v155_v45 = vmul.f32 %v727_v29, %v154_v32  ;;  %v158_v47 = vstv %s695_s13  ;;  %v133_v8 = vadd.f32 %v132_v55, %v129_v54 }
  0x2c   :  { %v163_v24 = vstv %s454_s15  ;;  %s718_s21 = sld [smem:[#allocation2 + $0x105]]  ;;  %v148_v34 = vadd.f32 %v147_v22, %v144_v21  ;;  %v159_v57 = vmul.f32 %v743_v43, %v158_v47 }
  0x2d   :  { %v164_v27 = vmul.f32 %v163_v24, %v680_v0  ;;  %v166_v28 = vstv %s455_s4  ;;  %s722_s3 = sld [smem:[#allocation2 + $0x180]]  ;;  %v780_v25 = vmax.f32 %v133_v8, 0.0 }
  0x2e   :  { %v169_v33 = vstv %s456_s16  ;;  %s732_s23 = sld [smem:[#allocation4 + $0x3]]  ;;  %v152_v46 = vadd.f32 %v151_v31, %v148_v34 }
  0x2f   :  { %v167_v35 = vadd.f32 %v166_v28, %v164_v27  ;;  %v170_v36 = vmul.f32 %v688_v3, %v169_v33  ;;  %v173_v37 = vstv %s457_s17  ;;  %s463_s6 = sld [smem:[#allocation2 + $0x181]] }
  0x30   :  { %v174_v38 = vmul.f32 %v700_v9, %v173_v37  ;;  %v177_v39 = vstv %s712_s20  ;;  %s464_s24 = sld [smem:[#allocation2 + $0x182]]  ;;  %v156_v61 = vadd.f32 %v155_v45, %v152_v46 }
  0x31   :  { %v171_v42 = vadd.f32 %v170_v36, %v167_v35  ;;  %s738_s25 = sld [smem:[#allocation2 + $0x183]]  ;;  %v178_v48 = vmul.f32 %v709_v19, %v177_v39  ;;  %v181_v51 = vstv %s716_s1 }
  0x32   :  { %s747_s29 = sld [smem:[#allocation2 + $0x184]]  ;;  %v182_v62 = vmul.f32 %v727_v29, %v181_v51  ;;  %v185_v4 = vstv %s718_s21  ;;  %v160_v12 = vadd.f32 %v159_v57, %v156_v61 }
  0x33   :  { %v190_v49 = vstv %s722_s3  ;;  %s752_s30 = sld [smem:[#allocation2 + $0x185]]  ;;  %v175_v50 = vadd.f32 %v174_v38, %v171_v42  ;;  %v186_v13 = vmul.f32 %v743_v43, %v185_v4 }
  0x34   :  { %v191_v52 = vmul.f32 %v190_v49, %v680_v0  ;;  %v193_v53 = vstv %s732_s23  ;;  %s468_s0 = sld [smem:[#allocation2 + $0x200]]  ;;  %v792_v32 = vmax.f32 %v160_v12, 0.0 }
  0x35   :  { %v196_v56 = vstv %s463_s6  ;;  %s758_s27 = sld [smem:[#allocation4 + $0x4]]  ;;  %v179_v2 = vadd.f32 %v178_v48, %v175_v50 }
  0x36   :  { %v194_v58 = vadd.f32 %v193_v53, %v191_v52  ;;  %v197_v59 = vmul.f32 %v688_v3, %v196_v56  ;;  %v200_v60 = vstv %s464_s24  ;;  %s470_s8 = sld [smem:[#allocation2 + $0x201]] }
  0x37   :  { %v201_v63 = vmul.f32 %v700_v9, %v200_v60  ;;  %v204_v1 = vstv %s738_s25  ;;  %s471_s9 = sld [smem:[#allocation2 + $0x202]]  ;;  %v183_v16 = vadd.f32 %v182_v62, %v179_v2 }
  0x38   :  { %v198_v5 = vadd.f32 %v197_v59, %v194_v58  ;;  %v205_v6 = vmul.f32 %v709_v19, %v204_v1  ;;  %s472_s10 = sld [smem:[#allocation2 + $0x203]]  ;;  %v208_v7 = vstv %s747_s29 }
  0x39   :  { %s768_s11 = sld [smem:[#allocation2 + $0x204]]  ;;  %v209_v18 = vmul.f32 %v727_v29, %v208_v7  ;;  %v212_v21 = vstv %s752_s30  ;;  %v187_v33 = vadd.f32 %v186_v13, %v183_v16 }
  0x3a   :  { %v202_v10 = vadd.f32 %v201_v63, %v198_v5  ;;  %v217_v11 = vstv %s468_s0  ;;  %s770_s12 = sld [smem:[#allocation2 + $0x205]] }
  0x3b   :  { %v218_v14 = vmul.f32 %v217_v11, %v680_v0  ;;  %v220_v15 = vstv %s758_s27  ;;  %s243_s13 = sld [smem:[#allocation6]]  ;;  %v798_v41 = vmax.f32 %v187_v33, 0.0 }
  0x3c   :  { %v206_v17 = vadd.f32 %v205_v6, %v202_v10  ;;  %v223_v20 = vstv %s470_s8  ;;  %s776_s2 = sld [smem:[#allocation7]] }
  0x3d   :  { %v221_v22 = vadd.f32 %v220_v15, %v218_v14  ;;  %v224_v23 = vmul.f32 %v688_v3, %v223_v20  ;;  %v227_v24 = vstv %s471_s9  ;;  %s475_s14 = sld [smem:[#allocation6 + $0x1]]  ;;  %v213_v3 = vmul.f32 %v743_v43, %v212_v21 }
  0x3e   :  { %v228_v0 = vmul.f32 %v700_v9, %v227_v24  ;;  %v231_v26 = vstv %s472_s10  ;;  %s783_s15 = sld [smem:[#allocation6 + $0x2]]  ;;  %v210_v31 = vadd.f32 %v209_v18, %v206_v17 }
  0x3f   :  { %v225_v27 = vadd.f32 %v224_v23, %v221_v22  ;;  %v232_v28 = vmul.f32 %v709_v19, %v231_v26  ;;  %v235_v30 = vstv %s768_s11  ;;  %s787_s4 = sld [smem:[#allocation6 + $0x3]] }
  0x40   :  { %s790_s16 = sld [smem:[#allocation6 + $0x4]]  ;;  %v236_v35 = vmul.f32 %v727_v29, %v235_v30  ;;  %v239_v38 = vstv %s770_s12  ;;  %v214_v40 = vadd.f32 %v213_v3, %v210_v31 }
  0x41   :  { %v229_v9 = vadd.f32 %v228_v0, %v225_v27  ;;  %v244_v34 = vstv %s243_s13  ;;  %s479_s17 = sld [smem:[#allocation6 + $0x80]]  ;;  %v240_v45 = vmul.f32 %v743_v43, %v239_v38 }
  0x42   :  { %v245_v19 = vmul.f32 %v244_v34, %v780_v25  ;;  %v247_v36 = vstv %s776_s2  ;;  %s480_s18 = sld [smem:[#allocation7 + $0x1]]  ;;  %v807_v48 = vmax.f32 %v214_v40, 0.0 }
  0x43   :  { %v233_v37 = vadd.f32 %v232_v28, %v229_v9  ;;  %v250_v39 = vstv %s475_s14  ;;  %s481_s19 = sld [smem:[#allocation6 + $0x81]] }
  0x44   :  { %s482_s20 = sld [smem:[#allocation6 + $0x82]]  ;;  %v248_v42 = vadd.f32 %v247_v36, %v245_v19  ;;  %v251_v44 = vmul.f32 %v250_v39, %v792_v32  ;;  %v254_v46 = vstv %s783_s15 }
  0x45   :  { %s801_s1 = sld [smem:[#allocation6 + $0x83]]  ;;  %v237_v29 = vadd.f32 %v236_v35, %v233_v37  ;;  %v255_v52 = vmul.f32 %v254_v46, %v798_v41  ;;  %v258_v53 = vstv %s787_s4 }
  0x46   :  { %s805_s21 = sld [smem:[#allocation6 + $0x84]]  ;;  %v252_v51 = vadd.f32 %v251_v44, %v248_v42  ;;  %v259_v58 = vmul.f32 %v258_v53, %v807_v48  ;;  %v262_v5 = vstv %s790_s16 }
  0x47   :  { %v267_v47 = vstv %s479_s17  ;;  %s485_s3 = sld [smem:[#allocation6 + $0x100]]  ;;  %v241_v55 = vadd.f32 %v240_v45, %v237_v29 }
  0x48   :  { %v268_v49 = vmul.f32 %v267_v47, %v780_v25  ;;  %v270_v50 = vstv %s480_s18  ;;  %s486_s5 = sld [smem:[#allocation7 + $0x2]]  ;;  %v256_v59 = vadd.f32 %v255_v52, %v252_v51 }
  0x49   :  { %v273_v54 = vstv %s481_s19  ;;  %s487_s22 = sld [smem:[#allocation6 + $0x101]]  ;;  %v817_v63 = vmax.f32 %v241_v55, 0.0 }
  0x4a   :  { %v271_v43 = vadd.f32 %v270_v50, %v268_v49  ;;  %v274_v56 = vmul.f32 %v273_v54, %v792_v32  ;;  %v277_v57 = vstv %s482_s20  ;;  %s488_s23 = sld [smem:[#allocation6 + $0x102]]  ;;  %v260_v15 = vadd.f32 %v259_v58, %v256_v59 }
  0x4b   :  { %s489_s6 = sld [smem:[#allocation6 + $0x103]]  ;;  %v278_v61 = vmul.f32 %v277_v57, %v798_v41  ;;  %v281_v1 = vstv %s801_s1  ;;  %v263_v16 = vmul.f32 %v262_v5, %v817_v63 }
  0x4c   :  { %s814_s24 = sld [smem:[#allocation6 + $0x104]]  ;;  %v275_v60 = vadd.f32 %v274_v56, %v271_v43  ;;  %v282_v12 = vmul.f32 %v281_v1, %v807_v48  ;;  %v285_v17 = vstv %s805_s21 }
  0x4d   :  { %v290_v62 = vstv %s485_s3  ;;  %s491_s25 = sld [smem:[#allocation6 + $0x180]]  ;;  %v286_v27 = vmul.f32 %v285_v17, %v817_v63  ;;  %v264_v30 = vadd.f32 %v263_v16, %v260_v15 }
  0x4e   :  { %v291_v2 = vmul.f32 %v290_v62, %v780_v25  ;;  %v293_v4 = vstv %s486_s5  ;;  %s821_s26 = sld [smem:[#allocation7 + $0x3]]  ;;  %v279_v11 = vadd.f32 %v278_v61, %v275_v60 }
  0x4f   :  { %v296_v6 = vstv %s487_s22  ;;  %s493_s28 = sld [smem:[#allocation6 + $0x181]]  ;;  %v848_v46 = vmax.f32 %v264_v30, 0.0 }
  0x50   :  { %v294_v7 = vadd.f32 %v293_v4, %v291_v2  ;;  %v297_v8 = vmul.f32 %v296_v6, %v792_v32  ;;  %v300_v10 = vstv %s488_s23  ;;  %s494_s29 = sld [smem:[#allocation6 + $0x182]]  ;;  %v283_v26 = vadd.f32 %v282_v12, %v279_v11 }
  0x51   :  { %v301_v13 = vmul.f32 %v300_v10, %v798_v41  ;;  %v304_v14 = vstv %s489_s6  ;;  %s495_s30 = sld [smem:[#allocation6 + $0x183]] }
  0x52   :  { %v298_v18 = vadd.f32 %v297_v8, %v294_v7  ;;  %s829_s0 = sld [smem:[#allocation6 + $0x184]]  ;;  %v305_v20 = vmul.f32 %v304_v14, %v807_v48  ;;  %v308_v23 = vstv %s814_s24  ;;  %v287_v39 = vadd.f32 %v286_v27, %v283_v26 }
  0x53   :  { %v313_v21 = vstv %s491_s25  ;;  %s497_s27 = sld [smem:[#allocation6 + $0x200]]  ;;  %v309_v34 = vmul.f32 %v308_v23, %v817_v63 }
  0x54   :  { %v302_v22 = vadd.f32 %v301_v13, %v298_v18  ;;  %v314_v24 = vmul.f32 %v313_v21, %v780_v25  ;;  %v316_v0 = vstv %s821_s26  ;;  %s835_s8 = sld [smem:[#allocation7 + $0x4]]  ;;  %v851_v54 = vmax.f32 %v287_v39, 0.0 }
  0x55   :  { %v319_v28 = vstv %s493_s28  ;;  %s499_s9 = sld [smem:[#allocation6 + $0x201]] }
  0x56   :  { %v317_v31 = vadd.f32 %v316_v0, %v314_v24  ;;  %v320_v3 = vmul.f32 %v319_v28, %v792_v32  ;;  %v323_v33 = vstv %s494_s29  ;;  %s500_s10 = sld [smem:[#allocation6 + $0x202]]  ;;  %v306_v9 = vadd.f32 %v305_v20, %v302_v22 }
  0x57   :  { %v324_v35 = vmul.f32 %v323_v33, %v798_v41  ;;  %v327_v19 = vstv %s495_s30  ;;  %s501_s11 = sld [smem:[#allocation6 + $0x203]] }
  0x58   :  { %v321_v36 = vadd.f32 %v320_v3, %v317_v31  ;;  %v328_v37 = vmul.f32 %v327_v19, %v807_v48  ;;  %v331_v38 = vstv %s829_s0  ;;  %s502_s12 = sld [smem:[#allocation6 + $0x204]]  ;;  %v310_v47 = vadd.f32 %v309_v34, %v306_v9 }
  0x59   :  { %v336_v40 = vstv %s497_s27  ;;  %s358_s13 = sld [smem:[#allocation9]]  ;;  %v332_v44 = vmul.f32 %v331_v38, %v817_v63 }
  0x5a   :  { %v325_v42 = vadd.f32 %v324_v35, %v321_v36  ;;  %v337_v29 = vmul.f32 %v336_v40, %v780_v25  ;;  %v339_v45 = vstv %s835_s8  ;;  %s846_s2 = sld [smem:[#allocation10]]  ;;  %v311_v59 = vmax.f32 %v310_v47, 0.0 }
  0x5b   :  { %v342_v49 = vstv %s499_s9  ;;  %s503_s14 = sld [smem:[#allocation9 + $0x1]] }
  0x5c   :  { %v329_v50 = vadd.f32 %v328_v37, %v325_v42  ;;  %v340_v51 = vadd.f32 %v339_v45, %v337_v29  ;;  %v343_v52 = vmul.f32 %v342_v49, %v792_v32  ;;  %v346_v53 = vstv %s500_s10  ;;  %s504_s15 = sld [smem:[#allocation9 + $0x2]] }
  0x5d   :  { %v347_v55 = vmul.f32 %v346_v53, %v798_v41  ;;  %v350_v25 = vstv %s501_s11  ;;  %s505_s4 = sld [smem:[#allocation9 + $0x3]] }
  0x5e   :  { %v333_v43 = vadd.f32 %v332_v44, %v329_v50  ;;  %v344_v56 = vadd.f32 %v343_v52, %v340_v51  ;;  %v351_v57 = vmul.f32 %v350_v25, %v807_v48  ;;  %v354_v58 = vstv %s502_s12  ;;  %s855_s16 = sld [smem:[#allocation9 + $0x4]] }
  0x5f   :  { %v355_v60 = vmul.f32 %v354_v58, %v817_v63  ;;  %v359_v32 = vstv %s358_s13  ;;  %s507_s17 = sld [smem:[#allocation9 + $0x80]] }
  0x60   :  { %v334_v61 = vmax.f32 %v333_v43, 0.0  ;;  %v348_v62 = vadd.f32 %v347_v55, %v344_v56  ;;  %v360_v1 = vmul.f32 %v359_v32, %v848_v46  ;;  %v362_v2 = vstv %s846_s2  ;;  %s508_s18 = sld [smem:[#allocation10 + $0x1]] }
  0x61   :  { %v365_v41 = vstv %s503_s14  ;;  %s509_s19 = sld [smem:[#allocation9 + $0x81]] }
  0x62   :  { %v352_v4 = vadd.f32 %v351_v57, %v348_v62  ;;  %v363_v5 = vadd.f32 %v362_v2, %v360_v1  ;;  %v366_v48 = vmul.f32 %v365_v41, %v851_v54  ;;  %v369_v6 = vstv %s504_s15  ;;  %s510_s20 = sld [smem:[#allocation9 + $0x82]] }
  0x63   :  { %v370_v7 = vmul.f32 %v369_v6, %v311_v59  ;;  %v373_v8 = vstv %s505_s4  ;;  %s511_s1 = sld [smem:[#allocation9 + $0x83]] }
  0x64   :  { %v356_v63 = vadd.f32 %v355_v60, %v352_v4  ;;  %v367_v10 = vadd.f32 %v366_v48, %v363_v5  ;;  %v374_v11 = vmul.f32 %v373_v8, %v334_v61  ;;  %s512_s21 = sld [smem:[#allocation9 + $0x84]]  ;;  %v377_v12 = vstv %s855_s16 }
  0x65   :  { %v381_v13 = vstv %s507_s17  ;;  %s513_s3 = sld [smem:[#allocation9 + $0x100]] }
  0x66   :  { %v357_v14 = vmax.f32 %v356_v63, 0.0  ;;  %v371_v15 = vadd.f32 %v370_v7, %v367_v10  ;;  %v382_v16 = vmul.f32 %v381_v13, %v848_v46  ;;  %v384_v17 = vstv %s508_s18  ;;  %s514_s5 = sld [smem:[#allocation10 + $0x2]] }
  0x67   :  { %v387_v18 = vstv %s509_s19  ;;  %s515_s22 = sld [smem:[#allocation9 + $0x101]] }
  0x68   :  { %v375_v20 = vadd.f32 %v374_v11, %v371_v15  ;;  %v378_v21 = vmul.f32 %v377_v12, %v357_v14  ;;  %v385_v22 = vadd.f32 %v384_v17, %v382_v16  ;;  %v388_v23 = vmul.f32 %v387_v18, %v851_v54  ;;  %s516_s23 = sld [smem:[#allocation9 + $0x102]] }
  0x69   :  { %v391_v24 = vstv %s510_s20  ;;  %v395_v0 = vstv %s511_s1  ;;  %s517_s6 = sld [smem:[#allocation9 + $0x103]] }
  0x6a   :  { %v379_v26 = vadd.f32 %v378_v21, %v375_v20  ;;  %v389_v27 = vadd.f32 %v388_v23, %v385_v22  ;;  %v392_v28 = vmul.f32 %v391_v24, %v311_v59  ;;  %v396_v30 = vmul.f32 %v395_v0, %v334_v61  ;;  %s518_s24 = sld [smem:[#allocation9 + $0x104]] }
  0x6b   :  { %v399_v31 = vstv %s512_s21  ;;  %v403_v3 = vstv %s513_s3 }
  0x6c   :  { %v393_v33 = vadd.f32 %v392_v28, %v389_v27  ;;  %v400_v9 = vmul.f32 %v399_v31, %v357_v14  ;;  %v404_v34 = vmul.f32 %v403_v3, %v848_v46  ;;  %v406_v35 = vstv %s514_s5  ;;  %424 = vst [vmem:[%s882_s7] sm:$0xff] %v379_v26 }
  0x6d   :  { %v409_v19 = vstv %s515_s22 }
  0x6e   :  { %v397_v36 = vadd.f32 %v396_v30, %v393_v33  ;;  %v407_v37 = vadd.f32 %v406_v35, %v404_v34  ;;  %v410_v38 = vmul.f32 %v409_v19, %v851_v54  ;;  %v413_v39 = vstv %s516_s23 }
  0x6f   :  { %v414_v40 = vmul.f32 %v413_v39, %v311_v59  ;;  %v417_v42 = vstv %s517_s6 }
  0x70   :  { %v401_v44 = vadd.f32 %v400_v9, %v397_v36  ;;  %v411_v29 = vadd.f32 %v410_v38, %v407_v37  ;;  %v418_v45 = vmul.f32 %v417_v42, %v334_v61  ;;  %v421_v47 = vstv %s518_s24 }
  0x71   :  { %v422_v50 = vmul.f32 %v421_v47, %v357_v14 }
  0x72   :  { %v415_v49 = vadd.f32 %v414_v40, %v411_v29  ;;  %519 = vst [vmem:[%s882_s7 + $0x8] sm:$0xff] %v401_v44 }
  0x74   :  { %v419_v46 = vadd.f32 %v418_v45, %v415_v49 }
  0x76   :  { %v423_v51 = vadd.f32 %v422_v50, %v419_v46 }
  0x78   :  { %520 = vst [vmem:[%s882_s7 + $0x10] sm:$0xff] %v423_v51 }
  0x79   :  { %433 = vsyncpa [#allocation3], 1 }
  0x7a   :  { %434 = vsyncpa [#allocation5], 1 }
  0x7b   :  { %435 = vsyncpa [#allocation8], 1 }
  0x7c   :  { %436 = vsyncpa [#allocation11], 1 }

</bundles_post_ra>
